<compile_context>
chip_gen: v7x
topology: tpu7x:2x2x1
jax: 0.10.0
libtpu: 0.0.40
codegen_flags: <defaults>
</compile_context>

<pallas_src>
import functools

import jax
import jax.numpy as jnp
from jax.experimental import pallas as pl
from jax.experimental.pallas import tpu as pltpu

IN_FEATURES = 512
OUT_FEATURES = 1
DEFAULT_BATCH_TILE = 4096  # rows of x per grid step (8 MiB f32)


def critic_kernel(x_ref, w_ref, b_ref, o_ref):
    # x_ref: [TB, 512] VMEM tile of the batch (streamed, double-buffered)
    # w_ref: [512, 1]  whole array, resident in VMEM (no per-step DMA)
    # b_ref: [1, 1]    SMEM scalar
    # o_ref: [TB, 1]   VMEM output tile
    acc = jnp.dot(x_ref[...], w_ref[...], preferred_element_type=jnp.float32)
    o_ref[...] = (acc + b_ref[0, 0]).astype(o_ref.dtype)


@functools.partial(jax.jit, static_argnames=("batch_tile",))
def critic_forward(x, w_t, b, *, batch_tile=DEFAULT_BATCH_TILE):
    """x: [B, 512] f32, w_t: [512, 1] f32, b: [1, 1] f32 -> [B, 1] f32."""
    B = x.shape[0]
    # Small batches: one full-array block.  Large batches: 4096-row tiles
    # (multiple of 8/128) with a masked remainder block at the grid edge.
    tb = B if B <= batch_tile else batch_tile
    grid = (pl.cdiv(B, tb),)

    # Explicit scoped-VMEM budget: double-buffered x tiles, double-buffered
    # lane-padded (tb, 128) out tiles, the resident (512,128)-padded weight,
    # plus headroom for compiler-internal scratch.
    vmem_bytes = (2 * tb * IN_FEATURES * 4          # x double buffer
                  + 2 * tb * 128 * 4                # out double buffer (lane-padded)
                  + IN_FEATURES * 128 * 4)          # resident weight (lane-padded)
    vmem_limit = min(max(32 << 20, vmem_bytes + (8 << 20)), 100 << 20)

    cost = pl.CostEstimate(
        flops=2 * B * IN_FEATURES * OUT_FEATURES,
        transcendentals=0,
        bytes_accessed=4 * (B * IN_FEATURES              # read x
                            + B * OUT_FEATURES           # write y
                            + IN_FEATURES * OUT_FEATURES # read w
                            + 1),                        # read b
    )

    return pl.pallas_call(
        critic_kernel,
        out_shape=jax.ShapeDtypeStruct((B, OUT_FEATURES), jnp.float32),
        grid_spec=pltpu.PrefetchScalarGridSpec(
            num_scalar_prefetch=0,
            grid=grid,
            in_specs=[
                # x: tiled along batch, streamed + double-buffered.
                pl.BlockSpec((tb, IN_FEATURES), lambda i: (i, 0)),
                # w: whole [512, 1] resident in VMEM (no tiling, no
                # double-buffering, no per-step DMA descriptor).
                pl.BlockSpec(memory_space=pltpu.MemorySpace.VMEM),
                # b: scalar in SMEM (no padded VMEM tile, no extra DMA stream).
                pl.BlockSpec(memory_space=pltpu.MemorySpace.SMEM),
            ],
            out_specs=pl.BlockSpec((tb, OUT_FEATURES), lambda i: (i, 0)),
        ),
        compiler_params=pltpu.CompilerParams(
            # Batch tiles are independent.  No-op on v5e/v6e (1 TC); on v7x a
            # core-parallel split of this axis is the next lever (see TODO).
            dimension_semantics=("parallel",),
            vmem_limit_bytes=vmem_limit,
        ),
        cost_estimate=cost,
    )(x, w_t, b)


def init_params(key):
    # Deterministic init mimicking nn.Linear's default:
    # U(-1/sqrt(fan_in), 1/sqrt(fan_in)) for both weight and bias.
    kw, kb = jax.random.split(key)
    bound = 1.0 / jnp.sqrt(jnp.float32(IN_FEATURES))
    # PyTorch weight is [out, in]; store transposed [in, out] for the kernel.
    w_t = jax.random.uniform(
        kw, (IN_FEATURES, OUT_FEATURES), jnp.float32, -bound, bound
    )
    b = jax.random.uniform(kb, (1, OUT_FEATURES), jnp.float32, -bound, bound)
    return w_t, b


if __name__ == "__main__":
    key = jax.random.PRNGKey(0)
    kx, kx2, kp = jax.random.split(key, 3)

    w_t, b = init_params(kp)

    # Small-shape check (batch = 2, single full-array block).
    B = 2
    x = jax.random.normal(kx, (B, IN_FEATURES), jnp.float32)
    y = jax.block_until_ready(critic_forward(x, w_t, b))
    y_ref = x @ w_t + b
    assert y.shape == (B, OUT_FEATURES)
    assert jnp.allclose(y, y_ref, atol=1e-5, rtol=1e-5)

    # Exercise the tiled/pipelined path: 2 grid steps + masked remainder tile.
    B2 = 4100
    x2 = jax.random.normal(kx2, (B2, IN_FEATURES), jnp.float32)
    y2 = jax.block_until_ready(critic_forward(x2, w_t, b))
    y2_ref = x2 @ w_t + b
    assert y2.shape == (B2, OUT_FEATURES)
    assert jnp.allclose(y2, y2_ref, atol=1e-5, rtol=1e-5)

    print("KERNEL_OK")
</pallas_src>

<mosaic_0001>
module attributes {stable_mosaic.version = 11 : i64} {
  func.func @critic_kernel(%arg0: i32, %arg1: memref<2x512xf32, #tpu.memory_space<vmem>>, %arg2: memref<512x1xf32, #tpu.memory_space<vmem>>, %arg3: memref<1x1xf32, #tpu.memory_space<smem>>, %arg4: memref<2x1xf32, #tpu.memory_space<vmem>>) attributes {dimension_semantics = [#tpu.dimension_semantics<parallel>], iteration_bounds = array<i64: 1>, scalar_prefetch = 0 : i64, scratch_operands = 0 : i64, tpu.core_type = #tpu.core_type<tc>, window_params = [{transform_indices = @transform_0, window_bounds = array<i64: 2, 512>}, {pipeline_mode = #tpu.pipeline_mode<synchronous>, transform_indices = @transform_1, window_bounds = array<i64: 512, 1>}, {transform_indices = @transform_2, window_bounds = array<i64: 1, 1>}, {transform_indices = @transform_3, window_bounds = array<i64: 2, 1>}]} {
    %c0 = arith.constant 0 : index
    %c0_0 = arith.constant 0 : index
    %0 = vector.load %arg1[%c0, %c0_0] : memref<2x512xf32, #tpu.memory_space<vmem>>, vector<2x512xf32>
    %c0_1 = arith.constant 0 : index
    %c0_2 = arith.constant 0 : index
    %1 = vector.load %arg2[%c0_1, %c0_2] : memref<512x1xf32, #tpu.memory_space<vmem>>, vector<512x1xf32>
    %cst = arith.constant dense<0.000000e+00> : vector<2x1xf32>
    %2 = tpu.matmul %0, %1, %cst {dimension_numbers = #tpu.dot_dimension_numbers<[1], [0], [0], [1], [0, 0, 1, 1], [], []>} : vector<2x512xf32>, vector<512x1xf32>, vector<2x1xf32> -> vector<2x1xf32>
    %c0_3 = arith.constant 0 : index
    %c0_4 = arith.constant 0 : index
    %3 = memref.load %arg3[%c0_3, %c0_4] : memref<1x1xf32, #tpu.memory_space<smem>>
    %4 = vector.broadcast %3 : f32 to vector<2x1xf32>
    %5 = arith.addf %2, %4 : vector<2x1xf32>
    %c0_5 = arith.constant 0 : index
    %c0_6 = arith.constant 0 : index
    %6 = vector.load %arg4[%c0_5, %c0_6] : memref<2x1xf32, #tpu.memory_space<vmem>>, vector<2x1xf32>
    tpu.vector_store %arg4[%c0_5, %c0_6], %5 {strides = array<i32>} : memref<2x1xf32, #tpu.memory_space<vmem>>, vector<2x1xf32>,
    return
  }
  func.func @transform_0(%arg0: i32) -> (i32, i32) {
    %c0_i32 = arith.constant 0 : i32
    %c0_i32_0 = arith.constant 0 : i32
    return %arg0, %c0_i32 : i32, i32
  }
  func.func @transform_1(%arg0: i32) -> (i32, i32) {
    %c0_i32 = arith.constant 0 : i32
    %c0_i32_0 = arith.constant 0 : i32
    %c0_i32_1 = arith.constant 0 : i32
    return %c0_i32, %c0_i32_0 : i32, i32
  }
  func.func @transform_2(%arg0: i32) -> (i32, i32) {
    %c0_i32 = arith.constant 0 : i32
    %c0_i32_0 = arith.constant 0 : i32
    %c0_i32_1 = arith.constant 0 : i32
    return %c0_i32, %c0_i32_0 : i32, i32
  }
  func.func @transform_3(%arg0: i32) -> (i32, i32) {
    %c0_i32 = arith.constant 0 : i32
    %c0_i32_0 = arith.constant 0 : i32
    return %arg0, %c0_i32 : i32, i32
  }
}

</mosaic_0001>

<bundles_post_ra>
// kernel: critic_forward.1
= control target key start
LH: loop header
LB: loop body
LE: loop exit
PB: predicated region body
PF: predicated region fallthrough
CT: control target
= control target key end

     0   :  { %v386_v47 = vmov 1983009808   ;;  %v87_v49 = vlaneseq  ;;  %vm244_vm0 = vcmask 1024   ;;  %s608_s1 = inlined_call_operand.vmem [shape: f32[512,1], index: 1, kind: input, shape index: {}]   ;;  %s609_s0 = inlined_call_operand.vmem [shape: f32[2,512], index: 0, kind: input, shape index: {}]   ;;  %s610_s2 = inlined_call_operand.<no memory space> [shape: f32[1,1], index: 2, kind: input, shape index: {}]   ;;  %s611_s3 = inlined_call_operand.vmem [shape: f32[2,1], index: 3, kind: output, shape index: {}]  }
   0x1   :  { %v32_v0 = vld [vmem:[%s608_s1 + $0x80] sm:$0xff]  ;;  %v33_v1 = vld [vmem:[%s608_s1 + $0x88] sm:$0xff]  ;;  %v34_v11 = vld [vmem:[%s608_s1 + $0x90] sm:$0xff]  ;;  %v85_v48 = vunpack.c.l.s4 %v386_v47 }
   0x2   :  { %v16_v2 = vld [vmem:[%s608_s1] sm:$0xff]  ;;  %v320_v3 = vpack.c.bf16 %v33_v1, %v32_v0  ;;  %v17_v4 = vld [vmem:[%s608_s1 + $0x8] sm:$0xff]  ;;  %v35_v13 = vld [vmem:[%s608_s1 + $0x98] sm:$0xff]  ;;  %v88_v0 = vshrl.u32 %v87_v49, 7 }
   0x3   :  { %v64_v5 = vld [vmem:[%s608_s1 + $0x180] sm:$0xff]  ;;  %v65_v6 = vld [vmem:[%s608_s1 + $0x188] sm:$0xff]  ;;  %v322_v7 = vpack.c.bf16 %v17_v4, %v16_v2  ;;  %v18_v14 = vld [vmem:[%s608_s1 + $0x10] sm:$0xff]  ;;  %v324_v16 = vpack.c.bf16 %v35_v13, %v34_v11  ;;  %v86_v63 = vunpack.c.0.s8 %v85_v48 }
   0x4   :  { %v352_v8 = vpack.c.bf16 %v65_v6, %v64_v5  ;;  %v48_v9 = vld [vmem:[%s608_s1 + $0x100] sm:$0xff]  ;;  %v49_v10 = vld [vmem:[%s608_s1 + $0x108] sm:$0xff]  ;;  %321 = vmatprep.subr.bf16.mxu0 %v320_v3  ;;  %v19_v15 = vld [vmem:[%s608_s1 + $0x18] sm:$0xff] }
   0x5   :  { %v354_v12 = vpack.c.bf16 %v49_v10, %v48_v9  ;;  %323 = vmatpush3.bf16.msra.mxu0 %v322_v7  ;;  %v326_v17 = vpack.c.bf16 %v19_v15, %v18_v14  ;;  %v66_v18 = vld [vmem:[%s608_s1 + $0x190] sm:$0xff]  ;;  %v67_v19 = vld [vmem:[%s608_s1 + $0x198] sm:$0xff]  ;;  %v36_v23 = vld [vmem:[%s608_s1 + $0xa0] sm:$0xff]  ;;  %v89_v13 = vsub.s32 %v86_v63, %v88_v0 }
   0x6   :  { %353 = vmatprep.subr.bf16.mxu1 %v352_v8  ;;  %v50_v20 = vld [vmem:[%s608_s1 + $0x110] sm:$0xff]  ;;  %v356_v21 = vpack.c.bf16 %v67_v19, %v66_v18  ;;  %v51_v22 = vld [vmem:[%s608_s1 + $0x118] sm:$0xff]  ;;  %v37_v24 = vld [vmem:[%s608_s1 + $0xa8] sm:$0xff]  ;;  %325 = vmatprep.subr.bf16.mxu0 %v324_v16 }
   0x7   :  { %355 = vmatpush3.bf16.msra.mxu1 %v354_v12  ;;  %v358_v25 = vpack.c.bf16 %v51_v22, %v50_v20  ;;  %v328_v26 = vpack.c.bf16 %v37_v24, %v36_v23  ;;  %v20_v27 = vld [vmem:[%s608_s1 + $0x20] sm:$0xff]  ;;  %v21_v28 = vld [vmem:[%s608_s1 + $0x28] sm:$0xff]  ;;  %v38_v35 = vld [vmem:[%s608_s1 + $0xb0] sm:$0xff] }
   0x8   :  { %v68_v29 = vld [vmem:[%s608_s1 + $0x1a0] sm:$0xff]  ;;  %357 = vmatprep.subr.bf16.mxu1 %v356_v21  ;;  %v69_v30 = vld [vmem:[%s608_s1 + $0x1a8] sm:$0xff]  ;;  %v330_v33 = vpack.c.bf16 %v21_v28, %v20_v27  ;;  %v39_v36 = vld [vmem:[%s608_s1 + $0xb8] sm:$0xff] }
   0x9   :  { %v52_v31 = vld [vmem:[%s608_s1 + $0x120] sm:$0xff]  ;;  %v53_v32 = vld [vmem:[%s608_s1 + $0x128] sm:$0xff]  ;;  %327 = vmatpush3.bf16.msra.mxu0 %v326_v17  ;;  %v360_v34 = vpack.c.bf16 %v69_v30, %v68_v29  ;;  %v22_v37 = vld [vmem:[%s608_s1 + $0x30] sm:$0xff]  ;;  %v332_v39 = vpack.c.bf16 %v39_v36, %v38_v35 }
   0xa   :  { %329 = vmatprep.subr.bf16.mxu0 %v328_v26  ;;  %v362_v38 = vpack.c.bf16 %v53_v32, %v52_v31  ;;  %v23_v40 = vld [vmem:[%s608_s1 + $0x38] sm:$0xff]  ;;  %v70_v41 = vld [vmem:[%s608_s1 + $0x1b0] sm:$0xff]  ;;  %v40_v46 = vld [vmem:[%s608_s1 + $0xc0] sm:$0xff] }
   0xb   :  { %359 = vmatpush3.bf16.msra.mxu1 %v358_v25  ;;  %v71_v42 = vld [vmem:[%s608_s1 + $0x1b8] sm:$0xff]  ;;  %v54_v44 = vld [vmem:[%s608_s1 + $0x130] sm:$0xff]  ;;  %v41_v50 = vld [vmem:[%s608_s1 + $0xc8] sm:$0xff]  ;;  %v334_v51 = vpack.c.bf16 %v23_v40, %v22_v37 }
   0xc   :  { %361 = vmatprep.subr.bf16.mxu1 %v360_v34  ;;  %v364_v43 = vpack.c.bf16 %v71_v42, %v70_v41  ;;  %v55_v45 = vld [vmem:[%s608_s1 + $0x138] sm:$0xff]  ;;  %v72_v52 = vld [vmem:[%s608_s1 + $0x1c0] sm:$0xff]  ;;  %v73_v53 = vld [vmem:[%s608_s1 + $0x1c8] sm:$0xff]  ;;  %v336_v55 = vpack.c.bf16 %v41_v50, %v40_v46 }
   0xd   :  { %331 = vmatpush3.bf16.msra.mxu0 %v330_v33  ;;  %v366_v54 = vpack.c.bf16 %v55_v45, %v54_v44  ;;  %v24_v56 = vld [vmem:[%s608_s1 + $0x40] sm:$0xff]  ;;  %v25_v57 = vld [vmem:[%s608_s1 + $0x48] sm:$0xff]  ;;  %v368_v59 = vpack.c.bf16 %v73_v53, %v72_v52  ;;  %v42_v61 = vld [vmem:[%s608_s1 + $0xd0] sm:$0xff]  ;;  %v81_v45 = vstv %s610_s2 }
   0xe   :  { %333 = vmatprep.subr.bf16.mxu0 %v332_v39  ;;  %v56_v58 = vld [vmem:[%s608_s1 + $0x140] sm:$0xff]  ;;  %v57_v60 = vld [vmem:[%s608_s1 + $0x148] sm:$0xff]  ;;  %v43_v62 = vld [vmem:[%s608_s1 + $0xd8] sm:$0xff]  ;;  %v338_v3 = vpack.c.bf16 %v25_v57, %v24_v56 }
   0xf   :  { %363 = vmatpush3.bf16.msra.mxu1 %v362_v38  ;;  %v74_v1 = vld [vmem:[%s608_s1 + $0x1d0] sm:$0xff]  ;;  %v75_v2 = vld [vmem:[%s608_s1 + $0x1d8] sm:$0xff]  ;;  %v370_v4 = vpack.c.bf16 %v57_v60, %v56_v58  ;;  %v340_v5 = vpack.c.bf16 %v43_v62, %v42_v61  ;;  %v44_v11 = vld [vmem:[%s608_s1 + $0xe0] sm:$0xff] }
  0x10   :  { %365 = vmatprep.subr.bf16.mxu1 %v364_v43  ;;  %v26_v6 = vld [vmem:[%s608_s1 + $0x50] sm:$0xff]  ;;  %v27_v7 = vld [vmem:[%s608_s1 + $0x58] sm:$0xff]  ;;  %v372_v9 = vpack.c.bf16 %v75_v2, %v74_v1  ;;  %v45_v12 = vld [vmem:[%s608_s1 + $0xe8] sm:$0xff] }
  0x11   :  { %335 = vmatpush3.bf16.msra.mxu0 %v334_v51  ;;  %v58_v8 = vld [vmem:[%s608_s1 + $0x150] sm:$0xff]  ;;  %v59_v10 = vld [vmem:[%s608_s1 + $0x158] sm:$0xff]  ;;  %v76_v14 = vld [vmem:[%s608_s1 + $0x1e0] sm:$0xff]  ;;  %v342_v16 = vpack.c.bf16 %v27_v7, %v26_v6  ;;  %v344_v19 = vpack.c.bf16 %v45_v12, %v44_v11 }
  0x12   :  { %337 = vmatprep.subr.bf16.mxu0 %v336_v55  ;;  %v77_v15 = vld [vmem:[%s608_s1 + $0x1e8] sm:$0xff]  ;;  %v28_v17 = vld [vmem:[%s608_s1 + $0x60] sm:$0xff]  ;;  %v374_v18 = vpack.c.bf16 %v59_v10, %v58_v8  ;;  %v46_v25 = vld [vmem:[%s608_s1 + $0xf0] sm:$0xff] }
  0x13   :  { %367 = vmatpush3.bf16.msra.mxu1 %v366_v54  ;;  %v29_v20 = vld [vmem:[%s608_s1 + $0x68] sm:$0xff]  ;;  %v60_v21 = vld [vmem:[%s608_s1 + $0x160] sm:$0xff]  ;;  %v376_v23 = vpack.c.bf16 %v77_v15, %v76_v14  ;;  %v47_v26 = vld [vmem:[%s608_s1 + $0xf8] sm:$0xff] }
  0x14   :  { %369 = vmatprep.subr.bf16.mxu1 %v368_v59  ;;  %v15_v22 = vld [vmem:[%s609_s0] sm:$0xff]  ;;  %v61_v24 = vld [vmem:[%s608_s1 + $0x168] sm:$0xff]  ;;  %v78_v29 = vld [vmem:[%s608_s1 + $0x1f0] sm:$0xff]  ;;  %v346_v31 = vpack.c.bf16 %v29_v20, %v28_v17  ;;  %v348_v35 = vpack.c.bf16 %v47_v26, %v46_v25 }
  0x15   :  { %339 = vmatpush3.bf16.msra.mxu0 %v338_v3  ;;  %v90_v27 = vrot.slane %v15_v22, %v89_v13  ;;  %v83_v28 = vcombine.high %v15_v22, %v15_v22  ;;  %v79_v30 = vld [vmem:[%s608_s1 + $0x1f8] sm:$0xff]  ;;  %v378_v34 = vpack.c.bf16 %v61_v24, %v60_v21  ;;  %v30_v36 = vld [vmem:[%s608_s1 + $0x70] sm:$0xff] }
  0x16   :  { %341 = vmatprep.subr.bf16.mxu0 %v340_v5  ;;  %v31_v37 = vld [vmem:[%s608_s1 + $0x78] sm:$0xff]  ;;  %v380_v38 = vpack.c.bf16 %v79_v30, %v78_v29  ;;  %v62_v39 = vld [vmem:[%s608_s1 + $0x170] sm:$0xff] }
  0x17   :  { %371 = vmatpush3.bf16.msra.mxu1 %v370_v4  ;;  %v98_v32 = vcombine.high %v90_v27, %v90_v27  ;;  %v97_v33 = vrot.slane %v83_v28, %v89_v13  ;;  %v63_v40 = vld [vmem:[%s608_s1 + $0x178] sm:$0xff]  ;;  %v350_v42 = vpack.c.bf16 %v31_v37, %v30_v36 }
  0x18   :  { %373 = vmatprep.subr.bf16.mxu1 %v372_v9  ;;  %v382_v43 = vpack.c.bf16 %v63_v40, %v62_v39 }
  0x19   :  { %343 = vmatpush3.bf16.msra.mxu0 %v342_v16  ;;  %168 = vmatprep.mubr.f32.mxu0 %v98_v32  ;;  %v99_v41 = vcombine.high %v97_v33, %v97_v33 }
  0x1a   :  { %345 = vmatprep.subr.bf16.mxu0 %v344_v19 }
  0x1b   :  { %375 = vmatpush3.bf16.msra.mxu1 %v374_v18  ;;  %238 = vmatprep.mubr.f32.mxu1 %v99_v41 }
  0x1c   :  { %377 = vmatprep.subr.bf16.mxu1 %v376_v23 }
  0x1d   :  { %347 = vmatpush3.bf16.msra.mxu0 %v346_v31 }
  0x1e   :  { %349 = vmatprep.subr.bf16.mxu0 %v348_v35 }
  0x1f   :  { %379 = vmatpush3.bf16.msra.mxu1 %v378_v34 }
  0x20   :  { %381 = vmatprep.subr.bf16.mxu1 %v380_v38 }
  0x21   :  { %351 = vmatpush3.bf16.msra.mxu0 %v350_v42 }
  0x23   :  { %383 = vmatpush3.bf16.msra.mxu1 %v382_v43 }
  0x24   :  { %169 = vmatmul.mubr.f32.vlgmr.msra.gmra.mrb[0].mxu0 %v90_v27 }
  0x26   :  { %239 = vmatmul.mubr.f32.vlgmr.msra.gmra.mrb[0].mxu1 %v97_v33 }
  0xf7   :  { %v282_v44 = vpop.f32.mrb[0].mxu0 }
  0xf8   :  { %v283_v46 = vpop.f32.mrb[1].mxu0 }
  0xf9   :  { %v317_v47 = vpop.f32.mrb[0].mxu1  ;;  %v284_v48 = vadd.f32 %v283_v46, %v282_v44 }
  0xfa   :  { %v318_v49 = vpop.f32.mrb[1].mxu1 }
  0xfb   :  { %v319_v50 = vadd.f32 %v318_v49, %v317_v47  ;;  %v171_v51 = vadd.f32 %v284_v48, %v81_v45 }
  0xfd   :  { %v241_v52 = vadd.f32 %v319_v50, %v171_v51 }
  0xff   :  { %245 = vst.msk [vmem:[%s611_s3] sm:$0x3] %vm244_vm0, %v241_v52 }

</bundles_post_ra>
